<compile_context>
chip_gen: v7x
topology: tpu7x:2x2x1
jax: 0.10.0
libtpu: 0.0.40
codegen_flags: <defaults>
</compile_context>

<pallas_src>
import functools

import jax
import jax.numpy as jnp
from jax.experimental import pallas as pl
from jax.experimental.pallas import tpu as pltpu

_LANE = 128
_MAX_TM = 512    # weight panel is re-streamed Mp/tm times -> keep tm large
_MAX_TN = 512
_MAX_TK = 2048   # "full K" up to this many columns, else chunk the reduction


def _round_up(x, m):
    return ((x + m - 1) // m) * m


def _sublane(itemsize):
    # sub-32-bit dtypes pack along sublanes (bf16 vreg = 16x128, int8 = 32x128)
    return {4: 8, 2: 16, 1: 32}.get(int(itemsize), 8)


def _vmem_budget_bytes():
    """Generation-aware VMEM budget with ~28% headroom for compiler scratch."""
    cap = None
    try:
        info = pltpu.get_tpu_info()
        cap = getattr(info, "vmem_capacity_bytes", None)
    except Exception:
        cap = None
    if not cap:
        cap = 64 * 1024 * 1024   # conservative fallback == v7x physical VMEM
    return int(cap * 0.72)


def _tile_vmem_need(tm, tn, tk, x_sz, w_sz, o_sz):
    # double-buffered x / W^T / out / bias tiles + resident f32 accumulator
    return (2 * (tm * tk * x_sz + tk * tn * w_sz + tm * tn * o_sz + tn * w_sz)
            + tm * tn * 4)


def _select_tiles(N, K, x_sz, w_sz, o_sz, budget):
    """Pick (tm_max, tn, tk): lane-dense, as large as the VMEM budget allows."""
    Np128 = _round_up(N, _LANE)
    Kp128 = _round_up(K, _LANE)
    tm = _MAX_TM
    tn = min(Np128, _MAX_TN)
    tk = min(Kp128, _MAX_TK)

    def halve_lane(v):
        return max(_LANE, (v // 2 // _LANE) * _LANE)

    # Shrink order: tk (only costs extra K steps), then tn (x refetch factor),
    # then tm (weight refetch factor -- most expensive to cut).
    while _tile_vmem_need(tm, tn, tk, x_sz, w_sz, o_sz) > budget:
        if tk > 512:
            tk = halve_lane(tk)
        elif tn > 256:
            tn = halve_lane(tn)
        elif tm > 256:
            tm = max(8, tm // 2)
        elif tk > _LANE:
            tk = halve_lane(tk)
        elif tn > _LANE:
            tn = halve_lane(tn)
        elif tm > 8:
            tm = max(8, tm // 2)
        else:
            break
    return tm, tn, tk


def _pick_tm(M, tm_max, sub):
    """Largest tm <= tm_max; prefer a divisor of M (avoids per-call pad/slice)."""
    tm = min(tm_max, _round_up(M, sub))
    tm = max(sub, (tm // sub) * sub)
    if M % tm == 0:
        return tm
    d = tm
    while d >= max(sub, tm // 2):
        if d % sub == 0 and M % d == 0:
            return d
        d -= sub
    return tm


# ---------------------------------------------------------------------------
# Kernels
# ---------------------------------------------------------------------------

def _matmul_bias_kernel(x_ref, w_ref, b_ref, o_ref, acc_ref):
    # x_ref: (tm, tk)  w_ref: (tk, tn)  b_ref: (1, tn)  o_ref: (tm, tn)
    @pl.when(pl.program_id(2) == 0)
    def _zero():
        acc_ref[...] = jnp.zeros_like(acc_ref)

    acc_ref[...] += jnp.dot(x_ref[...], w_ref[...],
                            preferred_element_type=jnp.float32)

    @pl.when(pl.program_id(2) == pl.num_programs(2) - 1)
    def _store():
        o_ref[...] = (acc_ref[...]
                      + b_ref[...].astype(jnp.float32)).astype(o_ref.dtype)


def _matmul_kernel(x_ref, w_ref, o_ref, acc_ref):
    @pl.when(pl.program_id(2) == 0)
    def _zero():
        acc_ref[...] = jnp.zeros_like(acc_ref)

    acc_ref[...] += jnp.dot(x_ref[...], w_ref[...],
                            preferred_element_type=jnp.float32)

    @pl.when(pl.program_id(2) == pl.num_programs(2) - 1)
    def _store():
        o_ref[...] = acc_ref[...].astype(o_ref.dtype)


def _tiled_linear(x2d, w_t, bias2d, *, tm, tn, tk):
    """y = x2d @ w_t (+ bias). Operands are already padded to tile multiples."""
    Mp, Kp = x2d.shape
    Kp2, Np = w_t.shape
    assert Kp == Kp2 and Mp % tm == 0 and Np % tn == 0 and Kp % tk == 0
    grid = (Mp // tm, Np // tn, Kp // tk)
    n_i, n_j, _ = grid

    x_sz = jnp.dtype(x2d.dtype).itemsize
    w_sz = jnp.dtype(w_t.dtype).itemsize
    o_sz = x_sz

    in_specs = [
        pl.BlockSpec((tm, tk), lambda i, j, k: (i, k)),   # x
        pl.BlockSpec((tk, tn), lambda i, j, k: (k, j)),   # W^T (streamed)
    ]
    operands = [x2d, w_t]
    if bias2d is not None:
        # Bias only depends on j -> fetched once per output-column tile.
        in_specs.append(pl.BlockSpec((1, tn), lambda i, j, k: (0, j)))
        operands.append(bias2d)
        kernel = _matmul_bias_kernel
    else:
        kernel = _matmul_kernel

    need = _tile_vmem_need(tm, tn, tk, x_sz, w_sz, o_sz)
    budget = _vmem_budget_bytes()
    vmem_limit = int(min(max(need + need // 2, 32 * 1024 * 1024), budget))

    bytes_accessed = (Mp * Kp * x_sz * n_j          # x re-streamed per N tile
                      + Kp * Np * w_sz * n_i        # W^T re-streamed per M tile
                      + Mp * Np * o_sz)
    if bias2d is not None:
        bytes_accessed += Np * w_sz * n_i
    cost = pl.CostEstimate(flops=2 * Mp * Np * Kp, transcendentals=0,
                           bytes_accessed=int(bytes_accessed))

    return pl.pallas_call(
        kernel,
        out_shape=jax.ShapeDtypeStruct((Mp, Np), x2d.dtype),
        grid_spec=pltpu.PrefetchScalarGridSpec(
            num_scalar_prefetch=0,
            grid=grid,
            in_specs=in_specs,
            out_specs=pl.BlockSpec((tm, tn), lambda i, j, k: (i, j)),
            scratch_shapes=[pltpu.VMEM((tm, tn), jnp.float32)],
        ),
        compiler_params=pltpu.CompilerParams(
            dimension_semantics=("parallel", "parallel", "arbitrary"),
            vmem_limit_bytes=vmem_limit,
        ),
        cost_estimate=cost,
    )(*operands)


@functools.partial(jax.jit, static_argnames=("out_features", "tm", "tn", "tk"))
def _column_parallel_forward(x, w_t, bias2d, *, out_features, tm, tn, tk):
    lead = x.shape[:-1]
    K = x.shape[-1]
    x2d = x.reshape(-1, K)
    M = x2d.shape[0]
    Kp, Np = w_t.shape
    Mp = _round_up(M, tm)

    # Only emit pad / slice copies when actually needed.
    if Mp != M or Kp != K:
        x2d = jnp.pad(x2d, ((0, Mp - M), (0, Kp - K)))
    out = _tiled_linear(x2d, w_t, bias2d, tm=tm, tn=tn, tk=tk)
    if Mp != M or Np != out_features:
        out = out[:M, :out_features]
    return out.reshape(lead + (out_features,))


# ---------------------------------------------------------------------------
# Module wrapper
# ---------------------------------------------------------------------------

class ColumnParallelLinearPallas:
    """JAX/Pallas emulation of ColumnParallelLinear (all TP ranks on one chip)."""

    def __init__(self, weight, bias, tp=2, gather_output=True,
                 skip_bias_add=False):
        weight = jnp.asarray(weight)
        bias = jnp.asarray(bias) if bias is not None else None

        self.tp = tp
        self.output_size, self.input_size = weight.shape
        assert self.output_size % tp == 0
        self.output_size_per_partition = self.output_size // tp
        self.gather_output = gather_output
        self.skip_bias_add = skip_bias_add

        # Emulated sharding: torch.split(weight, out_per_partition, dim=0)[idx].
        # gather_output=True re-concatenates all shards along dim 0 == FULL
        # weight; gather_output=False keeps rank 0's shard only.
        if gather_output:
            w_eff, b_eff = weight, bias
            self.out_features = self.output_size
        else:
            w_eff = weight[:self.output_size_per_partition, :]
            b_eff = (bias[:self.output_size_per_partition]
                     if bias is not None else None)
            self.out_features = self.output_size_per_partition

        K, N = self.input_size, self.out_features
        w_sz = jnp.dtype(w_eff.dtype).itemsize
        # Budget check assumes f32 activations (worst case) so the actual call
        # can only use less VMEM than planned.
        self.tm_max, self.tn, self.tk = _select_tiles(
            N, K, 4, w_sz, 4, _vmem_budget_bytes())

        Kp = _round_up(K, self.tk)
        Np = _round_up(N, self.tn)
        self.Kp, self.Np = Kp, Np

        # Pre-transpose the static weight ONCE: (N, K) -> (K, N), zero-padded,
        # so the kernel RHS is lane-dense along N (no in-kernel transpose).
        w_t = w_eff.T
        if Kp != K or Np != N:
            w_t = jnp.pad(w_t, ((0, Kp - K), (0, Np - N)))
        self.w_t = w_t

        self.use_bias = (b_eff is not None) and (not skip_bias_add)
        if self.use_bias:
            b2d = b_eff.reshape(1, N)
            if Np != N:
                b2d = jnp.pad(b2d, ((0, 0), (0, Np - N)))
            self.b2d = b2d
        else:
            self.b2d = None
        # NOTE: as in the reference forward(), only `output` is returned even
        # when skip_bias_add=True (the bias is simply not added).

    def __call__(self, x):
        # copy_to_tensor_model_parallel_region is identity in the forward pass.
        assert x.shape[-1] == self.input_size
        M = 1
        for d in x.shape[:-1]:
            M *= d
        M = max(M, 1)

        sub = _sublane(jnp.dtype(x.dtype).itemsize)
        tm = _pick_tm(M, self.tm_max, sub)

        # Keep >= 2 parallel output tiles when M collapses to a single tile so
        # the ("parallel","parallel") axes can still shard across 2 TCs (v7x).
        tn = self.tn
        if _round_up(M, tm) // tm == 1 and self.Np // tn == 1:
            half = tn // 2
            if half >= _LANE and half % _LANE == 0 and self.Np % half == 0:
                tn = half

        return _column_parallel_forward(
            x, self.w_t, self.b2d,
            out_features=self.out_features, tm=tm, tn=tn, tk=self.tk)


if __name__ == "__main__":
    # Small shapes implied by the forward: (batch, seq, hidden) @ Linear.
    batch, seq, in_features, out_features, tp = 2, 8, 32, 64, 2

    key = jax.random.PRNGKey(0)
    kx, kw, kb = jax.random.split(key, 3)
    x = jax.random.normal(kx, (batch, seq, in_features), dtype=jnp.float32)
    weight = jax.random.normal(kw, (out_features, in_features),
                               dtype=jnp.float32) * 0.05
    bias = jax.random.normal(kb, (out_features,), dtype=jnp.float32) * 0.05

    # gather_output=True: full output, bias fused.
    layer = ColumnParallelLinearPallas(weight, bias, tp=tp,
                                       gather_output=True,
                                       skip_bias_add=False)
    out = jax.block_until_ready(layer(x))
    ref = x @ weight.T + bias
    assert out.shape == (batch, seq, out_features), out.shape
    assert jnp.allclose(out, ref, atol=1e-4, rtol=1e-4), \
        float(jnp.max(jnp.abs(out - ref)))

    # gather_output=False: rank-0 partition only (no-concat, bias-fused path).
    layer_part = ColumnParallelLinearPallas(weight, bias, tp=tp,
                                            gather_output=False,
                                            skip_bias_add=False)
    out_p = jax.block_until_ready(layer_part(x))
    npp = out_features // tp
    ref_p = x @ weight[:npp].T + bias[:npp]
    assert out_p.shape == (batch, seq, npp), out_p.shape
    assert jnp.allclose(out_p, ref_p, atol=1e-4, rtol=1e-4), \
        float(jnp.max(jnp.abs(out_p - ref_p)))

    # skip_bias_add=True: bias-free kernel variant.
    layer_nb = ColumnParallelLinearPallas(weight, bias, tp=tp,
                                          gather_output=True,
                                          skip_bias_add=True)
    out_nb = jax.block_until_ready(layer_nb(x))
    assert jnp.allclose(out_nb, x @ weight.T, atol=1e-4, rtol=1e-4), \
        float(jnp.max(jnp.abs(out_nb - x @ weight.T)))

    print("KERNEL_OK")
</pallas_src>

<mosaic_0001>
module attributes {stable_mosaic.version = 11 : i64} {
  func.func @_matmul_bias_kernel(%arg0: i32, %arg1: i32, %arg2: i32, %arg3: memref<16x128xf32, #tpu.memory_space<vmem>>, %arg4: memref<128x128xf32, #tpu.memory_space<vmem>>, %arg5: memref<1x128xf32, #tpu.memory_space<vmem>>, %arg6: memref<16x128xf32, #tpu.memory_space<vmem>>, %arg7: memref<16x128xf32, #tpu.memory_space<vmem>>) attributes {dimension_semantics = [#tpu.dimension_semantics<parallel>, #tpu.dimension_semantics<parallel>, #tpu.dimension_semantics<arbitrary>], iteration_bounds = array<i64: 1, 1, 1>, scalar_prefetch = 0 : i64, scratch_operands = 1 : i64, tpu.core_type = #tpu.core_type<tc>, window_params = [{transform_indices = @transform_0, window_bounds = array<i64: 16, 128>}, {transform_indices = @transform_1, window_bounds = array<i64: 128, 128>}, {transform_indices = @transform_2, window_bounds = array<i64: 1, 128>}, {transform_indices = @transform_3, window_bounds = array<i64: 16, 128>}]} {
    %c0_i32 = arith.constant 0 : i32
    %0 = arith.cmpi eq, %arg2, %c0_i32 : i32
    %1 = arith.extui %0 : i1 to i32
    %c0_i32_0 = arith.constant 0 : i32
    %2 = arith.cmpi ne, %1, %c0_i32_0 : i32
    scf.if %2 {
      %cst_10 = arith.constant 0.000000e+00 : f32
      %12 = vector.broadcast %cst_10 : f32 to vector<16x128xf32>
      %c0_11 = arith.constant 0 : index
      %c0_12 = arith.constant 0 : index
      %13 = vector.load %arg7[%c0_11, %c0_12] : memref<16x128xf32, #tpu.memory_space<vmem>>, vector<16x128xf32>
      tpu.vector_store %arg7[%c0_11, %c0_12], %12 {strides = array<i32>} : memref<16x128xf32, #tpu.memory_space<vmem>>, vector<16x128xf32>,
    } else {
    }
    %c0 = arith.constant 0 : index
    %c0_1 = arith.constant 0 : index
    %3 = vector.load %arg7[%c0, %c0_1] : memref<16x128xf32, #tpu.memory_space<vmem>>, vector<16x128xf32>
    %c0_2 = arith.constant 0 : index
    %c0_3 = arith.constant 0 : index
    %4 = vector.load %arg3[%c0_2, %c0_3] : memref<16x128xf32, #tpu.memory_space<vmem>>, vector<16x128xf32>
    %c0_4 = arith.constant 0 : index
    %c0_5 = arith.constant 0 : index
    %5 = vector.load %arg4[%c0_4, %c0_5] : memref<128x128xf32, #tpu.memory_space<vmem>>, vector<128x128xf32>
    %cst = arith.constant dense<0.000000e+00> : vector<16x128xf32>
    %6 = tpu.matmul %4, %5, %cst {dimension_numbers = #tpu.dot_dimension_numbers<[1], [0], [0], [1], [0, 0, 1, 1], [], []>} : vector<16x128xf32>, vector<128x128xf32>, vector<16x128xf32> -> vector<16x128xf32>
    %7 = arith.addf %3, %6 : vector<16x128xf32>
    %c0_6 = arith.constant 0 : index
    %c0_7 = arith.constant 0 : index
    %8 = vector.load %arg7[%c0_6, %c0_7] : memref<16x128xf32, #tpu.memory_space<vmem>>, vector<16x128xf32>
    tpu.vector_store %arg7[%c0_6, %c0_7], %7 {strides = array<i32>} : memref<16x128xf32, #tpu.memory_space<vmem>>, vector<16x128xf32>,
    %c0_i32_8 = arith.constant 0 : i32
    %9 = arith.cmpi eq, %arg2, %c0_i32_8 : i32
    %10 = arith.extui %9 : i1 to i32
    %c0_i32_9 = arith.constant 0 : i32
    %11 = arith.cmpi ne, %10, %c0_i32_9 : i32
    scf.if %11 {
      %c0_10 = arith.constant 0 : index
      %c0_11 = arith.constant 0 : index
      %12 = vector.load %arg7[%c0_10, %c0_11] : memref<16x128xf32, #tpu.memory_space<vmem>>, vector<16x128xf32>
      %c0_12 = arith.constant 0 : index
      %c0_13 = arith.constant 0 : index
      %13 = vector.load %arg5[%c0_12, %c0_13] : memref<1x128xf32, #tpu.memory_space<vmem>>, vector<1x128xf32>
      %14 = vector.broadcast %13 : vector<1x128xf32> to vector<16x128xf32>
      %15 = arith.addf %12, %14 : vector<16x128xf32>
      %c0_14 = arith.constant 0 : index
      %c0_15 = arith.constant 0 : index
      %16 = vector.load %arg6[%c0_14, %c0_15] : memref<16x128xf32, #tpu.memory_space<vmem>>, vector<16x128xf32>
      tpu.vector_store %arg6[%c0_14, %c0_15], %15 {strides = array<i32>} : memref<16x128xf32, #tpu.memory_space<vmem>>, vector<16x128xf32>,
    } else {
    }
    return
  }
  func.func @transform_0(%arg0: i32, %arg1: i32, %arg2: i32) -> (i32, i32) {
    %c0_i32 = arith.constant 0 : i32
    return %arg0, %arg2 : i32, i32
  }
  func.func @transform_1(%arg0: i32, %arg1: i32, %arg2: i32) -> (i32, i32) {
    %c0_i32 = arith.constant 0 : i32
    return %arg2, %arg1 : i32, i32
  }
  func.func @transform_2(%arg0: i32, %arg1: i32, %arg2: i32) -> (i32, i32) {
    %c0_i32 = arith.constant 0 : i32
    %c0_i32_0 = arith.constant 0 : i32
    return %c0_i32, %arg1 : i32, i32
  }
  func.func @transform_3(%arg0: i32, %arg1: i32, %arg2: i32) -> (i32, i32) {
    %c0_i32 = arith.constant 0 : i32
    return %arg0, %arg1 : i32, i32
  }
}

</mosaic_0001>

<bundles_post_ra>
// kernel: _column_parallel_forward.1
= control target key start
LH: loop header
LB: loop body
LE: loop exit
PB: predicated region body
PF: predicated region fallthrough
CT: control target
= control target key end

     0   :  { %8 = vsyncpa [#allocation4], 0  ;;  %s267_s12 = smov [#allocation3]   ;;  %s317_s0 = inlined_call_operand.vmem [shape: f32[16,128], index: 0, kind: input, shape index: {}]   ;;  %s318_s1 = inlined_call_operand.hbm [shape: f32[128,128], index: 1, kind: input, shape index: {}]   ;;  %s319_s2 = inlined_call_operand.vmem [shape: f32[1,128], index: 2, kind: input, shape index: {}]   ;;  %s320_s3 = inlined_call_operand.vmem [shape: f32[16,128], index: 3, kind: output, shape index: {}]  }
   0x1   :  { %s16_s13 = sshll.u32 %s267_s12, 4  ;;  %s243_s16 = scalar_lea.hbm %s318_s1, 2048  ;;  %s17_s13 = int_to_ptr.vmem [resolvable:$true] %s16_s13 }
   0x2   :  { %p244_p0 = scmp.ne.s32.totalorder %s318_s1, %s243_s16  ;;  %p247_p1 = scmp.lt.u32.totalorder %s243_s16, %s318_s1 }
   0x4   :  { %p249_p2 = pnand %p247_p1, %p244_p0 }
   0x6   :  { %252 = shalt.err (!%p249_p2)
}
   0x7   :  { %s253_s21 = scalar_lea.vmem %s17_s13, 2048  ;;  %p258_p4 = scmp.lt.s32.totalorder %s17_s13, %s17_s13 }
   0x8   :  { %p254_p3 = scmp.ne.s32.totalorder %s17_s13, %s253_s21  ;;  %p259_p5 = scmp.lt.s32.totalorder %s253_s21, %s253_s21 }
   0xa   :  { %p260_p6 = por %p259_p5, %p258_p4 }
   0xc   :  { %p261_p7 = pnand %p260_p6, %p254_p3 }
   0xe   :  { %264 = shalt.err (!%p261_p7)
}
   0xf   :  { %s268_s22 = smov 128   ;;  %s269_s23 = smov 8  }
  0x10   :  { %22 = dma.hbm_to_vmem [thread:$0]  %s318_s1, 2048, %s17_s13, [#allocation4], %s268_s22, %s268_s22, %s269_s23  }
  0x11   :  { %265 = dma.done.wait [#allocation4], 2048  }
  0x12   :  { %266 = vsyncadd [#allocation4], 4294965248  ;;  %v38_v0 = vld [vmem:[#allocation3] sm:$0xff]  ;;  %v39_v1 = vld [vmem:[#allocation3 + $0x8] sm:$0xff] }
  0x13   :  { %v40_v2 = vld [vmem:[#allocation3 + $0x10] sm:$0xff]  ;;  %v208_v3 = vpack.c.bf16 %v39_v1, %v38_v0  ;;  %v41_v4 = vld [vmem:[#allocation3 + $0x18] sm:$0xff]  ;;  %v42_v6 = vld [vmem:[#allocation3 + $0x20] sm:$0xff] }
  0x14   :  { %v212_v5 = vpack.c.bf16 %v41_v4, %v40_v2  ;;  %v43_v7 = vld [vmem:[#allocation3 + $0x28] sm:$0xff]  ;;  %v36_v9 = vld [vmem:[%s317_s0] sm:$0xff]  ;;  %v44_v10 = vld [vmem:[#allocation3 + $0x30] sm:$0xff] }
  0x15   :  { %209 = vmatprep.subr.bf16.mxu0 %v208_v3  ;;  %v216_v8 = vpack.c.bf16 %v43_v7, %v42_v6  ;;  %v45_v11 = vld [vmem:[#allocation3 + $0x38] sm:$0xff]  ;;  %205 = vmatprep.mubr.f32.mxu0 %v36_v9  ;;  %v46_v13 = vld [vmem:[#allocation3 + $0x40] sm:$0xff]  ;;  %v47_v14 = vld [vmem:[#allocation3 + $0x48] sm:$0xff] }
  0x16   :  { %211 = vmatpush3.bf16.msra.mxu0 %v208_v3  ;;  %v220_v12 = vpack.c.bf16 %v45_v11, %v44_v10  ;;  %v224_v15 = vpack.c.bf16 %v47_v14, %v46_v13  ;;  %v48_v16 = vld [vmem:[#allocation3 + $0x50] sm:$0xff]  ;;  %v49_v17 = vld [vmem:[#allocation3 + $0x58] sm:$0xff]  ;;  %v50_v19 = vld [vmem:[#allocation3 + $0x60] sm:$0xff] }
  0x17   :  { %213 = vmatprep.subr.bf16.mxu0 %v212_v5  ;;  %v228_v18 = vpack.c.bf16 %v49_v17, %v48_v16  ;;  %v51_v20 = vld [vmem:[#allocation3 + $0x68] sm:$0xff]  ;;  %v52_v22 = vld [vmem:[#allocation3 + $0x70] sm:$0xff]  ;;  %v53_v23 = vld [vmem:[#allocation3 + $0x78] sm:$0xff] }
  0x18   :  { %v232_v21 = vpack.c.bf16 %v51_v20, %v50_v19  ;;  %v236_v24 = vpack.c.bf16 %v53_v23, %v52_v22  ;;  %v37_v25 = vld [vmem:[%s317_s0 + $0x8] sm:$0xff]  ;;  %v154_v26 = vld [vmem:[%s319_s2] ss:$0 sm:$0xff] }
  0x1a   :  { %215 = vmatpush3.bf16.msra.mxu0 %v212_v5 }
  0x1b   :  { %217 = vmatprep.subr.bf16.mxu0 %v216_v8 }
  0x1e   :  { %219 = vmatpush3.bf16.msra.mxu0 %v216_v8 }
  0x1f   :  { %221 = vmatprep.subr.bf16.mxu0 %v220_v12 }
  0x22   :  { %223 = vmatpush3.bf16.msra.mxu0 %v220_v12 }
  0x23   :  { %225 = vmatprep.subr.bf16.mxu0 %v224_v15 }
  0x26   :  { %227 = vmatpush3.bf16.msra.mxu0 %v224_v15 }
  0x27   :  { %229 = vmatprep.subr.bf16.mxu0 %v228_v18 }
  0x2a   :  { %231 = vmatpush3.bf16.msra.mxu0 %v228_v18 }
  0x2b   :  { %233 = vmatprep.subr.bf16.mxu0 %v232_v21 }
  0x2e   :  { %235 = vmatpush3.bf16.msra.mxu0 %v232_v21 }
  0x2f   :  { %237 = vmatprep.subr.bf16.mxu0 %v236_v24 }
  0x32   :  { %239 = vmatpush3.bf16.msra.mxu0 %v236_v24 }
  0x35   :  { %206 = vmatmul.mubr.f32.vlgmr.msra.gmra.mrb[0].mxu0 %v37_v25 }
 0x108   :  { %v207_v27 = vpop.f32.mrb[0].mxu0 }
 0x109   :  { %v146_v28 = vadd.f32 %v207_v27, %v154_v26  ;;  %v120_v29 = vpop.f32.mrb[1].mxu0 }
 0x10a   :  { %v145_v30 = vadd.f32 %v154_v26, %v120_v29 }
 0x10b   :  { %148 = vst [vmem:[%s320_s3 + $0x8] sm:$0xff] %v146_v28 }
 0x10c   :  { %147 = vst [vmem:[%s320_s3] sm:$0xff] %v145_v30 }
 0x10d   :  { %153 = vsyncpa [#allocation4], 1 }

</bundles_post_ra>
